<compile_context>
chip_gen: v5e
topology: v5e:2x2
jax: 0.10.0
libtpu: 0.0.40
codegen_flags: <defaults>
</compile_context>

<pallas_src>
import functools

import jax
import jax.numpy as jnp
from jax.experimental import pallas as pl
from jax.experimental.pallas import tpu as pltpu


def _channel_attention_kernel(x_ref, w1_ref, w2_ref, o_ref,
                              sum_acc, max_acc, *,
                              n_chunks, tile_hw, hw, inv_hw):
    # x_ref  : (1, C, tile_hw)  input slab for batch b, spatial tile k
    # w1_ref : (Ch, C)          Conv2d(C, Ch, 1, bias=False) weight (squeezed)
    # w2_ref : (C, Ch)          Conv2d(Ch, C, 1, bias=False) weight (squeezed)
    # o_ref  : (1, C, 1)        per-batch output column
    # sum_acc, max_acc : (C, 128) f32 narrow running accumulators (VMEM scratch)
    k = pl.program_id(1)
    has_tail = (hw % tile_hw) != 0          # compile-time Python bool

    if has_tail:
        # Lane index within a 128-wide chunk; hoisted out of the chunk loop.
        lane = jax.lax.broadcasted_iota(jnp.int32, (1, 128), 1)
        base = k * tile_hw                  # first spatial index of this tile

    # Hot loop: fold the (C, tile_hw) slab into a register-resident (C, 128)
    # partial.  One vld + 2 VALU per input vreg; no accumulator VMEM traffic.
    s = None
    m = None
    for c in range(n_chunks):
        chunk = x_ref[0, :, pl.ds(c * 128, 128)].astype(jnp.float32)  # (C, 128)
        if has_tail:
            # Mask BEFORE any arithmetic: padded lanes of the tail block hold
            # unspecified data.  Sum lanes -> 0, max lanes -> -inf.
            valid = (base + c * 128 + lane) < hw                      # (1, 128)
            c_s = jnp.where(valid, chunk, 0.0)
            c_m = jnp.where(valid, chunk, -jnp.inf)
        else:
            c_s = chunk
            c_m = chunk
        if s is None:
            s, m = c_s, c_m
        else:
            s = s + c_s
            m = jnp.maximum(m, c_m)

    # Merge the per-step partial into the narrow VMEM accumulators once per
    # grid step.  k == 0 writes directly, so no separate init pass is needed.
    @pl.when(k == 0)
    def _init():
        sum_acc[...] = s
        max_acc[...] = m

    @pl.when(k > 0)
    def _accumulate():
        sum_acc[...] += s
        max_acc[...] = jnp.maximum(max_acc[...], m)

    @pl.when(k == pl.num_programs(1) - 1)
    def _finalize():
        # Single cross-lane (XLU) reduction at the very end.
        avg = jnp.sum(sum_acc[...], axis=-1, keepdims=True) * inv_hw   # (C, 1)
        mx = jnp.max(max_acc[...], axis=-1, keepdims=True)             # (C, 1)

        # Fuse both FC branches into one MXU pass with a (C, 2) operand.  This
        # is valid because each column passes through the ReLU independently
        # before the columns are summed.
        v = jnp.concatenate([avg, mx], axis=-1)                            # (C, 2)
        h = jnp.dot(w1_ref[...], v, preferred_element_type=jnp.float32)    # (Ch, 2)
        h = jnp.maximum(h, 0.0)                                            # ReLU
        y = jnp.dot(w2_ref[...], h, preferred_element_type=jnp.float32)    # (C, 2)

        out = jax.nn.sigmoid(jnp.sum(y, axis=-1, keepdims=True))           # (C, 1)
        o_ref[0] = out.astype(o_ref.dtype)


def _vmem_capacity_bytes():
    """Physical per-TensorCore VMEM (64 MiB on v7x, 128 MiB on v5e/v6e)."""
    try:
        cap = int(pltpu.get_tpu_info().vmem_capacity_bytes)
        if cap > 0:
            return cap
    except Exception:
        pass
    return 64 * 1024 * 1024   # conservative fallback (v7x per-TC size)


def _pick_tile_hw(hw, c, ch, x_itemsize, w_itemsize, budget_bytes,
                  max_chunks=32):
    """Largest 128-lane-aligned spatial tile whose double-buffered input slab
    plus the narrow accumulators and (double-buffered) weights fit in
    `budget_bytes`.  The grid uses cdiv(hw, tile) with an in-kernel masked
    tail, so the tile never needs to divide H*W.  `max_chunks` bounds the
    unrolled chunk loop / register footprint of the per-step partial."""
    acc_bytes = 2 * c * 128 * 4                       # (C,128) f32 sum + max
    w_bytes = 2 * (2 * ch * c) * w_itemsize           # w1 + w2, double-buffered
    fixed = acc_bytes + w_bytes + 8 * 1024            # + output / slack
    chunk_bytes = 2 * c * 128 * x_itemsize            # double-buffered 128-lane column
    avail = max(budget_bytes - fixed, chunk_bytes)
    total_chunks = -(-hw // 128)
    n_chunks = int(max(1, min(avail // chunk_bytes, total_chunks, max_chunks)))
    return n_chunks * 128


def channel_attention(x, w1, w2, *, tile_hw=None, vmem_budget_bytes=None):
    """CBAM ChannelAttention forward.

    x  : (B, C, H, W)
    w1 : (C//16, C)   squeezed Conv2d(C, C//16, 1, bias=False) weight
    w2 : (C, C//16)   squeezed Conv2d(C//16, C, 1, bias=False) weight
    returns (B, C, 1, 1) sigmoid channel-attention weights.
    """
    B, C, H, W = x.shape
    Ch = w1.shape[0]
    HW = H * W
    x_flat = x.reshape(B, C, HW)

    cap = _vmem_capacity_bytes()
    if vmem_budget_bytes is None:
        # ~55% of physical VMEM for the pipeline; the rest is compiler headroom.
        vmem_budget_bytes = int(cap * 0.55)

    if tile_hw is None:
        tile_hw = _pick_tile_hw(HW, C, Ch, x.dtype.itemsize, w1.dtype.itemsize,
                                vmem_budget_bytes)
    assert tile_hw % 128 == 0, "spatial tile must be a multiple of 128 lanes"
    n_chunks = tile_hw // 128
    n_hw = -(-HW // tile_hw)          # cdiv; the tail tile is masked in-kernel

    kernel = functools.partial(_channel_attention_kernel,
                               n_chunks=n_chunks, tile_hw=tile_hw,
                               hw=HW, inv_hw=1.0 / HW)

    bytes_accessed = (x_flat.size * x.dtype.itemsize
                      + (w1.size + w2.size) * w1.dtype.itemsize
                      + B * C * x.dtype.itemsize)

    out3 = pl.pallas_call(
        kernel,
        out_shape=jax.ShapeDtypeStruct((B, C, 1), x.dtype),
        grid_spec=pltpu.PrefetchScalarGridSpec(
            num_scalar_prefetch=0,
            grid=(B, n_hw),
            in_specs=[
                pl.BlockSpec((1, C, tile_hw), lambda b, k: (b, 0, k)),
                # Constant index maps keep the (tiny) weights resident.
                # TODO(synk): for very large C, emit pooled (B, C, 2) stats from
                # the kernel (tileable over C) and do the FC + sigmoid in plain
                # JAX, dropping w1/w2 from VMEM entirely.
                pl.BlockSpec((Ch, C), lambda b, k: (0, 0)),
                pl.BlockSpec((C, Ch), lambda b, k: (0, 0)),
            ],
            out_specs=pl.BlockSpec((1, C, 1), lambda b, k: (b, 0, 0)),
            scratch_shapes=[
                pltpu.VMEM((C, 128), jnp.float32),   # narrow running sum
                pltpu.VMEM((C, 128), jnp.float32),   # narrow running max
            ],
        ),
        compiler_params=pltpu.CompilerParams(
            dimension_semantics=("parallel", "arbitrary"),
            vmem_limit_bytes=int(cap * 0.85),
        ),
        cost_estimate=pl.CostEstimate(
            flops=B * (2 * C * HW + 8 * C * Ch),
            transcendentals=B * C,
            bytes_accessed=bytes_accessed,
        ),
    )(x_flat, w1, w2)

    # TODO(synk): v7x B==1 megacore split — add a leading parallel grid axis of
    # size 2 halving the spatial range per TensorCore and combine the two
    # pooled partials in a tiny epilogue (both cores are busy for B >= 2).

    return out3.reshape(B, C, 1, 1)


if __name__ == "__main__":
    # Module hard-codes in_planes // 16 for the hidden dim, so use C >= 16.
    # H = W = 15 -> HW = 225: with tile_hw = 128 this exercises the
    # init / accumulate / finalize phases AND the masked tail tile (97 lanes).
    B, C, H, W = 2, 64, 15, 15
    Ch = C // 16  # hidden channels of the squeeze-excite bottleneck

    key = jax.random.PRNGKey(0)
    kx, k1, k2 = jax.random.split(key, 3)

    x = jax.random.normal(kx, (B, C, H, W), dtype=jnp.float32)
    # Conv2d(C, Ch, 1, bias=False) weight is (Ch, C, 1, 1); keep squeezed (Ch, C).
    w1 = jax.random.normal(k1, (Ch, C), dtype=jnp.float32) * 0.1
    # Conv2d(Ch, C, 1, bias=False) weight is (C, Ch, 1, 1); keep squeezed (C, Ch).
    w2 = jax.random.normal(k2, (C, Ch), dtype=jnp.float32) * 0.1

    out = channel_attention(x, w1, w2, tile_hw=128)
    jax.block_until_ready(out)

    # Sanity check against a pure-JAX reference of the PyTorch forward.
    avg = jnp.mean(x, axis=(2, 3))                     # (B, C)
    mx = jnp.max(x, axis=(2, 3))                       # (B, C)

    def fc_ref(v):
        return jnp.maximum(v @ w1.T, 0.0) @ w2.T

    ref = jax.nn.sigmoid(fc_ref(avg) + fc_ref(mx)).reshape(B, C, 1, 1)
    assert out.shape == (B, C, 1, 1)
    assert jnp.allclose(out, ref, atol=1e-5, rtol=1e-5)

    print("KERNEL_OK")
</pallas_src>

<mosaic_0001>
module attributes {stable_mosaic.version = 11 : i64} {
  func.func @_channel_attention_kernel(%arg0: i32, %arg1: i32, %arg2: memref<1x64x128xf32, #tpu.memory_space<vmem>>, %arg3: memref<4x64xf32, #tpu.memory_space<vmem>>, %arg4: memref<64x4xf32, #tpu.memory_space<vmem>>, %arg5: memref<1x64x1xf32, #tpu.memory_space<vmem>>, %arg6: memref<64x128xf32, #tpu.memory_space<vmem>>, %arg7: memref<64x128xf32, #tpu.memory_space<vmem>>) attributes {dimension_semantics = [#tpu.dimension_semantics<parallel>, #tpu.dimension_semantics<arbitrary>], iteration_bounds = array<i64: 2, 2>, scalar_prefetch = 0 : i64, scratch_operands = 2 : i64, tpu.core_type = #tpu.core_type<tc>, window_params = [{transform_indices = @transform_0, window_bounds = array<i64: 1, 64, 128>}, {pipeline_mode = #tpu.pipeline_mode<synchronous>, transform_indices = @transform_1, window_bounds = array<i64: 4, 64>}, {pipeline_mode = #tpu.pipeline_mode<synchronous>, transform_indices = @transform_2, window_bounds = array<i64: 64, 4>}, {transform_indices = @transform_3, window_bounds = array<i64: 1, 64, 1>}]} {
    %0 = tpu.iota {dimensions = array<i32: 1>} : vector<1x128xi32>
    %c128_i32 = arith.constant 128 : i32
    %1 = arith.muli %arg1, %c128_i32 : i32
    %c0 = arith.constant 0 : index
    %c0_0 = arith.constant 0 : index
    %c0_1 = arith.constant 0 : index
    %2 = vector.load %arg2[%c0, %c0_0, %c0_1] : memref<1x64x128xf32, #tpu.memory_space<vmem>>, vector<1x64x128xf32>
    %3 = vector.shape_cast %2 : vector<1x64x128xf32> to vector<64x128xf32>
    %c0_i32 = arith.constant 0 : i32
    %4 = arith.addi %1, %c0_i32 : i32
    %5 = vector.broadcast %4 : i32 to vector<1x128xi32>
    %6 = arith.addi %5, %0 : vector<1x128xi32>
    %c225_i32 = arith.constant 225 : i32
    %7 = vector.broadcast %c225_i32 : i32 to vector<1x128xi32>
    %8 = arith.cmpi slt, %6, %7 : vector<1x128xi32>
    %cst = arith.constant 0.000000e+00 : f32
    %9 = vector.shape_cast %8 : vector<1x128xi1> to vector<1x128xi1>
    %10 = vector.broadcast %9 : vector<1x128xi1> to vector<64x128xi1>
    %11 = vector.broadcast %cst : f32 to vector<64x128xf32>
    %12 = arith.select %10, %3, %11 : vector<64x128xi1>, vector<64x128xf32>
    %cst_2 = arith.constant 0xFF800000 : f32
    %13 = vector.shape_cast %8 : vector<1x128xi1> to vector<1x128xi1>
    %14 = vector.broadcast %13 : vector<1x128xi1> to vector<64x128xi1>
    %15 = vector.broadcast %cst_2 : f32 to vector<64x128xf32>
    %16 = arith.select %14, %3, %15 : vector<64x128xi1>, vector<64x128xf32>
    %c0_i32_3 = arith.constant 0 : i32
    %17 = arith.cmpi eq, %arg1, %c0_i32_3 : i32
    %18 = arith.extui %17 : i1 to i32
    %c0_i32_4 = arith.constant 0 : i32
    %19 = arith.cmpi ne, %18, %c0_i32_4 : i32
    scf.if %19 {
      %c0_8 = arith.constant 0 : index
      %c0_9 = arith.constant 0 : index
      %26 = vector.load %arg6[%c0_8, %c0_9] : memref<64x128xf32, #tpu.memory_space<vmem>>, vector<64x128xf32>
      tpu.vector_store %arg6[%c0_8, %c0_9], %12 {strides = array<i32>} : memref<64x128xf32, #tpu.memory_space<vmem>>, vector<64x128xf32>,
      %c0_10 = arith.constant 0 : index
      %c0_11 = arith.constant 0 : index
      %27 = vector.load %arg7[%c0_10, %c0_11] : memref<64x128xf32, #tpu.memory_space<vmem>>, vector<64x128xf32>
      tpu.vector_store %arg7[%c0_10, %c0_11], %16 {strides = array<i32>} : memref<64x128xf32, #tpu.memory_space<vmem>>, vector<64x128xf32>,
    } else {
    }
    %c0_i32_5 = arith.constant 0 : i32
    %20 = arith.cmpi sgt, %arg1, %c0_i32_5 : i32
    %21 = arith.extui %20 : i1 to i32
    %c0_i32_6 = arith.constant 0 : i32
    %22 = arith.cmpi ne, %21, %c0_i32_6 : i32
    scf.if %22 {
      %c0_8 = arith.constant 0 : index
      %c0_9 = arith.constant 0 : index
      %26 = vector.load %arg6[%c0_8, %c0_9] : memref<64x128xf32, #tpu.memory_space<vmem>>, vector<64x128xf32>
      %27 = arith.addf %26, %12 : vector<64x128xf32>
      %c0_10 = arith.constant 0 : index
      %c0_11 = arith.constant 0 : index
      %28 = vector.load %arg6[%c0_10, %c0_11] : memref<64x128xf32, #tpu.memory_space<vmem>>, vector<64x128xf32>
      tpu.vector_store %arg6[%c0_10, %c0_11], %27 {strides = array<i32>} : memref<64x128xf32, #tpu.memory_space<vmem>>, vector<64x128xf32>,
      %c0_12 = arith.constant 0 : index
      %c0_13 = arith.constant 0 : index
      %29 = vector.load %arg7[%c0_12, %c0_13] : memref<64x128xf32, #tpu.memory_space<vmem>>, vector<64x128xf32>
      %30 = arith.maximumf %29, %16 : vector<64x128xf32>
      %c0_14 = arith.constant 0 : index
      %c0_15 = arith.constant 0 : index
      %31 = vector.load %arg7[%c0_14, %c0_15] : memref<64x128xf32, #tpu.memory_space<vmem>>, vector<64x128xf32>
      tpu.vector_store %arg7[%c0_14, %c0_15], %30 {strides = array<i32>} : memref<64x128xf32, #tpu.memory_space<vmem>>, vector<64x128xf32>,
    } else {
    }
    %c1_i32 = arith.constant 1 : i32
    %23 = arith.cmpi eq, %arg1, %c1_i32 : i32
    %24 = arith.extui %23 : i1 to i32
    %c0_i32_7 = arith.constant 0 : i32
    %25 = arith.cmpi ne, %24, %c0_i32_7 : i32
    scf.if %25 {
      %c0_8 = arith.constant 0 : index
      %c0_9 = arith.constant 0 : index
      %26 = vector.load %arg6[%c0_8, %c0_9] : memref<64x128xf32, #tpu.memory_space<vmem>>, vector<64x128xf32>
      %cst_10 = arith.constant dense<0.000000e+00> : vector<64xf32>
      %27 = vector.multi_reduction <add>, %26, %cst_10 [1] : vector<64x128xf32> to vector<64xf32>
      %28 = vector.shape_cast %27 : vector<64xf32> to vector<64x1xf32>
      %cst_11 = arith.constant 0.00444444455 : f32
      %29 = vector.broadcast %cst_11 : f32 to vector<64x1xf32>
      %30 = arith.mulf %28, %29 : vector<64x1xf32>
      %c0_12 = arith.constant 0 : index
      %c0_13 = arith.constant 0 : index
      %31 = vector.load %arg7[%c0_12, %c0_13] : memref<64x128xf32, #tpu.memory_space<vmem>>, vector<64x128xf32>
      %cst_14 = arith.constant dense<0xFF800000> : vector<64xf32>
      %32 = vector.multi_reduction <maximumf>, %31, %cst_14 [1] : vector<64x128xf32> to vector<64xf32>
      %33 = vector.shape_cast %32 : vector<64xf32> to vector<64x1xf32>
      %34 = tpu.concatenate %30, %33 in 1 : vector<64x1xf32>, vector<64x1xf32> -> vector<64x2xf32>
      %c0_15 = arith.constant 0 : index
      %c0_16 = arith.constant 0 : index
      %35 = vector.load %arg3[%c0_15, %c0_16] : memref<4x64xf32, #tpu.memory_space<vmem>>, vector<4x64xf32>
      %cst_17 = arith.constant dense<0.000000e+00> : vector<4x2xf32>
      %36 = tpu.matmul %35, %34, %cst_17 {dimension_numbers = #tpu.dot_dimension_numbers<[1], [0], [0], [1], [0, 0, 1, 1], [], []>} : vector<4x64xf32>, vector<64x2xf32>, vector<4x2xf32> -> vector<4x2xf32>
      %cst_18 = arith.constant 0.000000e+00 : f32
      %37 = vector.broadcast %cst_18 : f32 to vector<4x2xf32>
      %38 = arith.maximumf %36, %37 : vector<4x2xf32>
      %c0_19 = arith.constant 0 : index
      %c0_20 = arith.constant 0 : index
      %39 = vector.load %arg4[%c0_19, %c0_20] : memref<64x4xf32, #tpu.memory_space<vmem>>, vector<64x4xf32>
      %cst_21 = arith.constant dense<0.000000e+00> : vector<64x2xf32>
      %40 = tpu.matmul %39, %38, %cst_21 {dimension_numbers = #tpu.dot_dimension_numbers<[1], [0], [0], [1], [0, 0, 1, 1], [], []>} : vector<64x4xf32>, vector<4x2xf32>, vector<64x2xf32> -> vector<64x2xf32>
      %cst_22 = arith.constant dense<0.000000e+00> : vector<64xf32>
      %41 = vector.multi_reduction <add>, %40, %cst_22 [1] : vector<64x2xf32> to vector<64xf32>
      %42 = vector.shape_cast %41 : vector<64xf32> to vector<64x1xf32>
      %43 = arith.negf %42 : vector<64x1xf32>
      %44 = math.exp %43 : vector<64x1xf32>
      %cst_23 = arith.constant 1.000000e+00 : f32
      %45 = vector.broadcast %cst_23 : f32 to vector<64x1xf32>
      %46 = arith.addf %45, %44 : vector<64x1xf32>
      %47 = arith.divf %45, %46 : vector<64x1xf32>
      %c0_24 = arith.constant 0 : index
      %c0_25 = arith.constant 0 : index
      %c0_26 = arith.constant 0 : index
      %48 = vector.load %arg5[%c0_24, %c0_25, %c0_26] : memref<1x64x1xf32, #tpu.memory_space<vmem>>, vector<1x64x1xf32>
      %49 = vector.shape_cast %48 : vector<1x64x1xf32> to vector<64x1xf32>
      %50 = vector.shape_cast %47 : vector<64x1xf32> to vector<1x64x1xf32>
      tpu.vector_store %arg5[%c0_24, %c0_25, %c0_26], %50 {strides = array<i32>} : memref<1x64x1xf32, #tpu.memory_space<vmem>>, vector<1x64x1xf32>,
    } else {
    }
    return
  }
  func.func @transform_0(%arg0: i32, %arg1: i32) -> (i32, i32, i32) {
    %c0_i32 = arith.constant 0 : i32
    %c0_i32_0 = arith.constant 0 : i32
    return %arg0, %c0_i32, %arg1 : i32, i32, i32
  }
  func.func @transform_1(%arg0: i32, %arg1: i32) -> (i32, i32) {
    %c0_i32 = arith.constant 0 : i32
    %c0_i32_0 = arith.constant 0 : i32
    %c0_i32_1 = arith.constant 0 : i32
    return %c0_i32, %c0_i32_0 : i32, i32
  }
  func.func @transform_2(%arg0: i32, %arg1: i32) -> (i32, i32) {
    %c0_i32 = arith.constant 0 : i32
    %c0_i32_0 = arith.constant 0 : i32
    %c0_i32_1 = arith.constant 0 : i32
    return %c0_i32, %c0_i32_0 : i32, i32
  }
  func.func @transform_3(%arg0: i32, %arg1: i32) -> (i32, i32, i32) {
    %c0_i32 = arith.constant 0 : i32
    %c0_i32_0 = arith.constant 0 : i32
    %c0_i32_1 = arith.constant 0 : i32
    return %arg0, %c0_i32, %c0_i32_0 : i32, i32, i32
  }
}

</mosaic_0001>

<bundles_post_ra>
// kernel: tpu_custom_call.1
= control target key start
LH: loop header
LB: loop body
LE: loop exit
PB: predicated region body
PF: predicated region fallthrough
CT: control target
= control target key end

     0   :  { %8 = vsyncpa [#allocation5], 0  ;;  %s1308_s0 = inlined_call_operand.hbm [shape: f32[2,64,225], index: 0, kind: input, shape index: {}]   ;;  %s1309_s1 = inlined_call_operand.vmem [shape: f32[4,64], index: 1, kind: input, shape index: {}]   ;;  %s1310_s2 = inlined_call_operand.vmem [shape: f32[64,4], index: 2, kind: input, shape index: {}]   ;;  %s1311_s3 = inlined_call_operand.vmem [shape: f32[2,64,1], index: 3, kind: output, shape index: {}]  }
   0x1   :  { %10 = vsyncpa [#allocation5 + $0x1], 0  ;;  %s1015_s12 = smov 0   ;;  %s1017_s13 = smov 0  }
   0x2   :  { %s1019_s14 = smov 0   ;;  %s1021_s15 = smov 0  }
   0x3   :  { %s1023_s16 = smov 0   ;;  %s1025_s17 = smov 0  }
   0x4   :  { %s1027_s18 = smov 0   ;;  %s1029_s19 = smov 0  }
   0x5 LB: > { %s750_s20 = sadd.s32 4294967295, %s990_s19   ;;  %s25_s21 = sadd.s32 1, %s982_s17  ;;  %s990_s19 = sphi %s1029_s19, %s16_s19   ;;  %s986_s18 = sphi %s1027_s18, %s1322_s18   ;;  %s982_s17 = sphi %s1025_s17, %s1321_s17   ;;  %s978_s16 = sphi %s1023_s16, %s1320_s16   ;;  %s974_s15 = sphi %s1021_s15, %s1319_s15   ;;  %s970_s14 = sphi %s1019_s14, %s1318_s14   ;;  %s966_s13 = sphi %s1017_s13, %s1317_s13   ;;  %s962_s12 = sphi %s1015_s12, %s1316_s12  }
   0x6   : > { %p26_p0 = scmp.ge.s32.totalorder %s25_s21, 2  ;;  %s28_s22 = sadd.s32 1, %s986_s18 }
   0x7   : > { %s37_s23 = sadd.s32 1, %s970_s14  ;;  %p44_p1 = scmp.ne.s32.totalorder %s970_s14, %s966_s13 }
   0x8   : > { %s1324_s21 = smov (%p26_p0, %s25_s21), 0  ;;  %s1326_s22 = smov (!%p26_p0, %s28_s22), %s986_s18 }
   0x9   : > { %s33_s24 = ssub.s32 %s982_s17, %s1324_s21  ;;  %p45_p2 = scmp.eq.s32.totalorder %s990_s19, 0 }
   0xa   : > { %p30_p3 = scmp.ge.s32.totalorder %s1326_s22, 2  ;;  %p50_p4 = scmp.ne.s32.totalorder %s966_s13, %s962_s12 }
   0xb   : > { %p1066_p5 = por %p45_p2, %p44_p1  ;;  %p51_p6 = scmp.eq.s32.totalorder %s750_s20, 0 }
   0xc   : > { %s1328_s22 = smov (%p30_p3, %s1326_s22), 0  ;;  %p794_p8 = scmp.lt.s32.totalorder %s990_s19, 4 }
   0xd   : > { %p1072_p7 = por %p51_p6, %p50_p4  ;;  %s32_s27 = ssub.s32 %s986_s18, %s1328_s22 }
   0xe   : > { %s34_s28 = sor.u32 %s33_s24, %s32_s27  ;;  %s148_s29 = sand.u32 1, %s970_s14  }
   0xf   : > { %p35_p9 = scmp.eq.s32.totalorder %s34_s28, 0  ;;  %s754_s30 = sshll.u32 %s148_s29, 6 }
  0x10   : > { %s755_s4 = sshll.u32 %s986_s18, 4  ;;  %s152_s8 = scalar_lea.vmem [#allocation4], %s754_s30 }
  0x11   : > { %s1082_s5 = scalar_select %p35_p9, %s970_s14, %s37_s23  }
  0x12   : > { %s156_s6 = sadd.s32 %s982_s17, %s755_s4  ;;  %s161_s9 = sshll.u32 %s152_s8, 4  ;;  %s162_s9 = int_to_ptr.vmem [resolvable:$true] %s161_s9 }
  0x13   : > { %s756_s7 = sshll.u32 %s156_s6, 3  ;;  %p791_p10 = pnand %p794_p8, %p1066_p5 }
  0x14   : > { %s158_s12 = scalar_lea.hbm %s1308_s0, %s756_s7  ;;  %p757_p11 = scmp.ge.s32.totalorder %s990_s19, 1 }
  0x15   : > { %s159_s20 = sshll.u32 %s158_s12, 4  ;;  %s149_s24 = scalar_lea.sflag [#allocation5], %s148_s29  ;;  %s160_s20 = int_to_ptr.hbm [resolvable:$true] %s159_s20 }
  0x16   : > { %s992_s27 = smov 256   ;;  %s993_s23 = smov 128  }
  0x17   : > { %s994_s28 = smov 8   ;;  %p169_p12 = scmp.lt.s32.totalorder %s990_s19, 5 }
  0x18   : > { %793 = dma.hbm_to_vmem [thread:$0]  (!%p791_p10), %s160_s20, 1024, %s162_s9, %s149_s24, %s992_s27, %s993_s23, %s994_s28  }
  0x19   : > { %p170_p13 = pnand %p757_p11, %p169_p12 }
  0x1a   : > { %s175_s30 = sand.u32 (!%p170_p13), 1, %s966_s13  }
  0x1b   : > { %173 = sbr.rel (%p170_p13) target bundleno = 680 (0x2a8), region = 32  ;;  %s758_s4 = sshll.u32 (!%p170_p13), %s175_s30, 6 }
  0x1c   : > { %s176_s6 = scalar_lea.sflag (!%p170_p13), [#allocation5], %s175_s30  ;;  %s179_s7 = scalar_lea.vmem (!%p170_p13), [#allocation4], %s758_s4 }
  0x20   : > { %957 = dma.done.wait (%p1072_p7), %s176_s6, 1024  }
  0x21   : > { %959 = vsyncadd (%p1072_p7), %s176_s6, 4294966272  ;;  %v208_v0 = vlaneseq  ;;  %s761_s25 = sshll.u32 %s974_s15, 7  ;;  %p203_p0 = scmp.lt.s32.totalorder %s978_s16, 1  ;;  %v211_v4 = vld [vmem:[%s179_s7] sm:$0xff]  ;;  %v212_v5 = vld [vmem:[%s179_s7 + $0x8] sm:$0xff] }
  0x22   : > { %v219_v1 = vstv %s761_s25  ;;  %v213_v6 = vld [vmem:[%s179_s7 + $0x10] sm:$0xff]  ;;  %v214_v7 = vld [vmem:[%s179_s7 + $0x18] sm:$0xff]  ;;  %v215_v8 = vld [vmem:[%s179_s7 + $0x20] sm:$0xff]  ;;  %p762_p1 = scmp.ne.s32.totalorder %s974_s15, 0 }
  0x23   : > { %v209_v2 = vand.u32 127, %v208_v0  ;;  %s1330_s16 = smov (!%p203_p0, %s978_s16), 1  ;;  %v216_v9 = vld [vmem:[%s179_s7 + $0x28] sm:$0xff]  ;;  %v217_v13 = vld [vmem:[%s179_s7 + $0x30] sm:$0xff]  ;;  %v218_v14 = vld [vmem:[%s179_s7 + $0x38] sm:$0xff] }
  0x24   : > { %s785_s29 = sshll.u32 %s1330_s16, 6 }
  0x25   : > { %v220_v3 = vadd.s32 %v219_v1, %v209_v2  ;;  %s1105_s10 = scalar_lea.vmem %s1311_s3, %s785_s29 }
  0x27   : > { %vm221_vm0 = vcmp.lt.s32.totalorder %v220_v3, 225  ;;  %243 = sbr.rel (%p762_p1) target bundleno = 60 (0x3c), region = 40 }
  0x28   : > { %v224_v10 = vsel %vm221_vm0, %v211_v4, 0.0  ;;  %v225_v11 = vsel %vm221_vm0, %v212_v5, 0.0  ;;  %v226_v12 = vsel %vm221_vm0, %v213_v6, 0.0  ;;  %v227_v15 = vsel %vm221_vm0, %v214_v7, 0.0 }
  0x29   : > { %v228_v16 = vsel %vm221_vm0, %v215_v8, 0.0  ;;  %v229_v17 = vsel %vm221_vm0, %v216_v9, 0.0  ;;  %v1114_v18 = vsel %vm221_vm0, %v211_v4, -inf  ;;  %v230_v19 = vsel %vm221_vm0, %v217_v13, 0.0 }
  0x2a   : > { %v231_v20 = vsel %vm221_vm0, %v218_v14, 0.0  ;;  %v1119_v21 = vsel %vm221_vm0, %v212_v5, -inf  ;;  %v1122_v22 = vsel %vm221_vm0, %v213_v6, -inf  ;;  %v1125_v23 = vsel %vm221_vm0, %v214_v7, -inf }
  0x2b   : > { %v1128_v24 = vsel %vm221_vm0, %v215_v8, -inf  ;;  %v1131_v25 = vsel %vm221_vm0, %v216_v9, -inf  ;;  %v1134_v26 = vsel %vm221_vm0, %v217_v13, -inf  ;;  %v1137_v27 = vsel %vm221_vm0, %v218_v14, -inf }
  0x2c   : > { %244 = vst [vmem:[#allocation2 + $0x30] sm:$0xff] %v224_v10 }
  0x2d   : > { %245 = vst [vmem:[#allocation2] sm:$0xff] %v225_v11 }
  0x2e   : > { %246 = vst [vmem:[#allocation2 + $0x18] sm:$0xff] %v226_v12 }
  0x2f   : > { %247 = vst [vmem:[#allocation2 + $0x10] sm:$0xff] %v227_v15 }
  0x30   : > { %248 = vst [vmem:[#allocation2 + $0x8] sm:$0xff] %v228_v16 }
  0x31   : > { %249 = vst [vmem:[#allocation2 + $0x20] sm:$0xff] %v229_v17 }
  0x32   : > { %250 = vst [vmem:[#allocation2 + $0x28] sm:$0xff] %v230_v19 }
  0x33   : > { %251 = vst [vmem:[#allocation2 + $0x38] sm:$0xff] %v231_v20 }
  0x34   : > { %252 = vst [vmem:[#allocation3] sm:$0xff] %v1114_v18 }
  0x35   : > { %253 = vst [vmem:[#allocation3 + $0x18] sm:$0xff] %v1119_v21 }
  0x36   : > { %254 = vst [vmem:[#allocation3 + $0x10] sm:$0xff] %v1122_v22 }
  0x37   : > { %255 = vst [vmem:[#allocation3 + $0x20] sm:$0xff] %v1125_v23 }
  0x38   : > { %256 = vst [vmem:[#allocation3 + $0x28] sm:$0xff] %v1128_v24 }
  0x39   : > { %257 = vst [vmem:[#allocation3 + $0x8] sm:$0xff] %v1131_v25 }
  0x3a   : > { %258 = vst [vmem:[#allocation3 + $0x30] sm:$0xff] %v1134_v26 }
  0x3b   : > { %259 = vst [vmem:[#allocation3 + $0x38] sm:$0xff] %v1137_v27 }
  0x3c PF: > { %p763_p2 = scmp.le.s32.totalorder %s974_s15, 0 }
  0x3e   : > { %263 = sbr.rel (%p763_p2) target bundleno = 86 (0x56), region = 44 }
  0x43   : > { %v264_v28 = vld [vmem:[#allocation2 + $0x30] sm:$0xff]  ;;  %v265_v29 = vld [vmem:[#allocation2] sm:$0xff]  ;;  %v266_v30 = vld [vmem:[#allocation2 + $0x18] sm:$0xff] }
  0x44   : > { %v272_v31 = vadd.f32 %v264_v28, %v224_v10  ;;  %v273_v32 = vadd.f32 %v265_v29, %v225_v11  ;;  %v274_v33 = vadd.f32 %v266_v30, %v226_v12  ;;  %v267_v34 = vld [vmem:[#allocation2 + $0x10] sm:$0xff]  ;;  %v268_v35 = vld [vmem:[#allocation2 + $0x8] sm:$0xff]  ;;  %v269_v36 = vld [vmem:[#allocation2 + $0x20] sm:$0xff] }
  0x45   : > { %v275_v37 = vadd.f32 %v267_v34, %v227_v15  ;;  %v270_v38 = vld [vmem:[#allocation2 + $0x28] sm:$0xff]  ;;  %v276_v39 = vadd.f32 %v268_v35, %v228_v16  ;;  %v271_v40 = vld [vmem:[#allocation2 + $0x38] sm:$0xff]  ;;  %v277_v41 = vadd.f32 %v269_v36, %v229_v17  ;;  %v288_v42 = vld [vmem:[#allocation3] sm:$0xff] }
  0x46   : > { %280 = vst [vmem:[#allocation2 + $0x30] sm:$0xff] %v272_v31  ;;  %v278_v43 = vadd.f32 %v270_v38, %v230_v19  ;;  %v289_v44 = vld [vmem:[#allocation3 + $0x18] sm:$0xff]  ;;  %v279_v45 = vadd.f32 %v271_v40, %v231_v20  ;;  %v290_v46 = vld [vmem:[#allocation3 + $0x10] sm:$0xff]  ;;  %v296_v47 = vmax.f32 %v288_v42, %v1114_v18  ;;  %v291_v48 = vld [vmem:[#allocation3 + $0x20] sm:$0xff] }
  0x47   : > { %281 = vst [vmem:[#allocation2] sm:$0xff] %v273_v32  ;;  %v297_v49 = vmax.f32 %v289_v44, %v1119_v21  ;;  %v292_v50 = vld [vmem:[#allocation3 + $0x28] sm:$0xff]  ;;  %v298_v51 = vmax.f32 %v290_v46, %v1122_v22  ;;  %v299_v53 = vmax.f32 %v291_v48, %v1125_v23  ;;  %v294_v54 = vld [vmem:[#allocation3 + $0x30] sm:$0xff]  ;;  %v295_v56 = vld [vmem:[#allocation3 + $0x38] sm:$0xff] }
  0x48   : > { %282 = vst [vmem:[#allocation2 + $0x18] sm:$0xff] %v274_v33  ;;  %v293_v52 = vld [vmem:[#allocation3 + $0x8] sm:$0xff]  ;;  %v300_v55 = vmax.f32 %v292_v50, %v1128_v24  ;;  %v302_v58 = vmax.f32 %v294_v54, %v1134_v26  ;;  %v303_v59 = vmax.f32 %v295_v56, %v1137_v27 }
  0x49   : > { %283 = vst [vmem:[#allocation2 + $0x10] sm:$0xff] %v275_v37  ;;  %v301_v57 = vmax.f32 %v293_v52, %v1131_v25 }
  0x4a   : > { %284 = vst [vmem:[#allocation2 + $0x8] sm:$0xff] %v276_v39 }
  0x4b   : > { %285 = vst [vmem:[#allocation2 + $0x20] sm:$0xff] %v277_v41 }
  0x4c   : > { %286 = vst [vmem:[#allocation2 + $0x28] sm:$0xff] %v278_v43 }
  0x4d   : > { %287 = vst [vmem:[#allocation2 + $0x38] sm:$0xff] %v279_v45 }
  0x4e   : > { %304 = vst [vmem:[#allocation3] sm:$0xff] %v296_v47 }
  0x4f   : > { %305 = vst [vmem:[#allocation3 + $0x18] sm:$0xff] %v297_v49 }
  0x50   : > { %306 = vst [vmem:[#allocation3 + $0x10] sm:$0xff] %v298_v51 }
  0x51   : > { %307 = vst [vmem:[#allocation3 + $0x20] sm:$0xff] %v299_v53 }
  0x52   : > { %308 = vst [vmem:[#allocation3 + $0x28] sm:$0xff] %v300_v55 }
  0x53   : > { %309 = vst [vmem:[#allocation3 + $0x8] sm:$0xff] %v301_v57 }
  0x54   : > { %310 = vst [vmem:[#allocation3 + $0x30] sm:$0xff] %v302_v58 }
  0x55   : > { %311 = vst [vmem:[#allocation3 + $0x38] sm:$0xff] %v303_v59 }
  0x56 PF: > { %p764_p3 = scmp.ne.s32.totalorder %s974_s15, 1 }
  0x58   : > { %315 = sbr.rel (%p764_p3) target bundleno = 680 (0x2a8), region = 48 }
  0x5d   : > { %v355_v60 = vld [vmem:[#allocation3 + $0x38] sm:$0xff]  ;;  %v354_v61 = vld [vmem:[#allocation3 + $0x30] sm:$0xff]  ;;  %v321_v63 = vld [vmem:[#allocation2 + $0x20] sm:$0xff]  ;;  %vm372_vm1 = vcmask 7168   ;;  %vm382_vm2 = vcmask 523264   ;;  %vm440_vm3 = vcmask 1043456  }
  0x5e   : > { %v323_v62 = vld [vmem:[#allocation2 + $0x38] sm:$0xff]  ;;  %370 = vmax.xlane.f32.xlu1 %v355_v60  ;;  %368 = vmax.xlane.f32.xlu2 %v354_v61  ;;  %v320_v0 = vld [vmem:[#allocation2 + $0x8] sm:$0xff]  ;;  %v319_v3 = vld [vmem:[#allocation2 + $0x10] sm:$0xff]  ;;  %vm415_vm4 = vcmask 31744   ;;  %vm485_vm5 = vcmask 15360  }
  0x5f   : > { %338 = vadd.xlane.f32.xlu0 %v323_v62  ;;  %v322_v1 = vld [vmem:[#allocation2 + $0x28] sm:$0xff]  ;;  %v351_v5 = vld [vmem:[#allocation3 + $0x20] sm:$0xff]  ;;  %v318_v7 = vld [vmem:[#allocation2 + $0x18] sm:$0xff] }
  0x60   : > { %v352_v2 = vld [vmem:[#allocation3 + $0x28] sm:$0xff]  ;;  %v317_v6 = vld [vmem:[#allocation2] sm:$0xff]  ;;  %v349_v8 = vld [vmem:[#allocation3 + $0x18] sm:$0xff] }
  0x61   : > { %v353_v4 = vld [vmem:[#allocation3 + $0x8] sm:$0xff]  ;;  %v316_v9 = vld [vmem:[#allocation2 + $0x30] sm:$0xff]  ;;  %v348_v11 = vld [vmem:[#allocation3] sm:$0xff] }
  0x62   : > { %v350_v10 = vld [vmem:[#allocation3 + $0x10] sm:$0xff]  ;;  %v381_v43 = vld [vmem:[%s1309_s1] sm:$0xf]  ;;  %v410_v48 = vld [vmem:[%s1310_s2 + $0x18] sm:$0xff] }
  0x63   : > { %v407_v47 = vld [vmem:[%s1310_s2] sm:$0xff]  ;;  %v413_v49 = vld [vmem:[%s1310_s2 + $0x30] sm:$0xff]  ;;  %v408_v50 = vld [vmem:[%s1310_s2 + $0x8] sm:$0xff] }
  0x64   : > { %v411_v51 = vld [vmem:[%s1310_s2 + $0x20] sm:$0xff]  ;;  %v414_v52 = vld [vmem:[%s1310_s2 + $0x38] sm:$0xff]  ;;  %v409_v53 = vld [vmem:[%s1310_s2 + $0x10] sm:$0xff] }
  0x65   : > { %v412_v54 = vld [vmem:[%s1310_s2 + $0x28] sm:$0xff] }
  0x66   : > { %334 = vadd.xlane.f32.xlu1 %v321_v63  ;;  %332 = vadd.xlane.f32.xlu2 %v320_v0 }
  0x67   : > { %336 = vadd.xlane.f32.xlu0 %v322_v1 }
  0x6e   : > { %364 = vmax.xlane.f32.xlu2 %v352_v2  ;;  %330 = vadd.xlane.f32.xlu1 %v319_v3 }
  0x6f   : > { %366 = vmax.xlane.f32.xlu0 %v353_v4 }
  0x76   : > { %362 = vmax.xlane.f32.xlu1 %v351_v5  ;;  %326 = vadd.xlane.f32.xlu2 %v317_v6 }
  0x77   : > { %328 = vadd.xlane.f32.xlu0 %v318_v7 }
  0x7e   : > { %358 = vmax.xlane.f32.xlu2 %v349_v8  ;;  %324 = vadd.xlane.f32.xlu1 %v316_v9 }
  0x7f   : > { %360 = vmax.xlane.f32.xlu0 %v350_v10 }
  0x87   : > { %356 = vmax.xlane.f32.xlu0 %v348_v11 }
  0xd1   : > { %v371_v12 = vpop.xlane.xlu1 %370  ;;  %v369_v13 = vpop.xlane.xlu2 %368 }
  0xd2   : > { %v339_v14 = vpop.xlane.xlu0 %338 }
  0xd3   : > { %v347_v15 = vmul.f32 0.0044444446, %v339_v14 }
  0xd5   : > { %v380_v16 = vsel %vm372_vm1, %v347_v15, %v371_v12 }
  0xd6   : > { %394 = vmatpush.msra.mxu0 %v380_v16 }
  0xd9   : > { %v335_v17 = vpop.xlane.xlu1 %334  ;;  %v333_v18 = vpop.xlane.xlu2 %332 }
  0xda   : > { %v337_v19 = vpop.xlane.xlu0 %336  ;;  %v345_v22 = vmul.f32 0.0044444446, %v335_v17  ;;  %v344_v23 = vmul.f32 0.0044444446, %v333_v18 }
  0xdb   : > { %v346_v20 = vmul.f32 0.0044444446, %v337_v19 }
  0xdd   : > { %v379_v21 = vsel %vm372_vm1, %v346_v20, %v369_v13 }
  0xde   : > { %395 = vmatpush.msra.mxu0 %v379_v21 }
  0xe1   : > { %v365_v24 = vpop.xlane.xlu2 %364  ;;  %v331_v25 = vpop.xlane.xlu1 %330 }
  0xe2   : > { %v367_v26 = vpop.xlane.xlu0 %366  ;;  %v377_v28 = vsel %vm372_vm1, %v344_v23, %v365_v24  ;;  %v343_v29 = vmul.f32 0.0044444446, %v331_v25 }
  0xe3   : > { %v378_v27 = vsel %vm372_vm1, %v345_v22, %v367_v26 }
  0xe4   : > { %396 = vmatpush.msra.mxu0 %v378_v27 }
  0xe6   : > { %397 = vmatpush.msra.mxu0 %v377_v28 }
  0xe9   : > { %v363_v30 = vpop.xlane.xlu1 %362  ;;  %v327_v31 = vpop.xlane.xlu2 %326 }
  0xea   : > { %v329_v32 = vpop.xlane.xlu0 %328  ;;  %v376_v33 = vsel %vm372_vm1, %v343_v29, %v363_v30  ;;  %v341_v35 = vmul.f32 0.0044444446, %v327_v31 }
  0xeb   : > { %398 = vmatpush.msra.mxu0 %v376_v33  ;;  %v342_v34 = vmul.f32 0.0044444446, %v329_v32 }
  0xf1   : > { %v359_v37 = vpop.xlane.xlu2 %358  ;;  %v325_v39 = vpop.xlane.xlu1 %324 }
  0xf2   : > { %v361_v36 = vpop.xlane.xlu0 %360  ;;  %v374_v40 = vsel %vm372_vm1, %v341_v35, %v359_v37  ;;  %v340_v41 = vmul.f32 0.0044444446, %v325_v39 }
  0xf3   : > { %v375_v38 = vsel %vm372_vm1, %v342_v34, %v361_v36 }
  0xf4   : > { %399 = vmatpush.msra.mxu0 %v375_v38 }
  0xf6   : > { %400 = vmatpush.msra.mxu0 %v374_v40 }
  0xfa   : > { %v357_v42 = vpop.xlane.xlu0 %356 }
  0xfb   : > { %v373_v44 = vsel %vm372_vm1, %v340_v41, %v357_v42 }
  0xfc   : > { %401 = vmatpush.msra.mxu0 %v373_v44 }
  0xfd   : > { %765 = vmatmul.msk.f32.vlgmr.msra.gmra.mxu0 %vm382_vm2, %v381_v43 }
 0x17a   : > { %v403_v45 = vpop.f32.mrf.mxu0 }
 0x17b   : > { %v406_v46 = vmax.f32 %v403_v45, 0.0 }
 0x17d   : > { %766 = vmatpush.msk.msra.mxu1 %vm440_vm3, %v406_v46  ;;  %786 = vmatpush.msk.msra.mxu2 %vm440_vm3, %v406_v46 }
 0x17e   : > { %787 = vmatpush.msk.msra.mxu3 %vm440_vm3, %v406_v46  ;;  %767 = vmatmul.msk.f32.vlgmr.msra.gmra.mxu1 %vm415_vm4, %v407_v47 }
 0x17f   : > { %770 = vmatmul.msk.f32.vlgmr.msra.gmra.mxu2 %vm415_vm4, %v410_v48  ;;  %773 = vmatmul.msk.f32.vlgmr.msra.gmra.mxu3 %vm415_vm4, %v413_v49 }
 0x186   : > { %768 = vmatmul.msk.f32.gmra.mxu1 %vm415_vm4, %v408_v50 }
 0x187   : > { %771 = vmatmul.msk.f32.gmra.mxu2 %vm415_vm4, %v411_v51  ;;  %774 = vmatmul.msk.f32.gmra.mxu3 %vm415_vm4, %v414_v52 }
 0x18e   : > { %769 = vmatmul.msk.f32.gmra.mxu1 %vm415_vm4, %v409_v53 }
 0x18f   : > { %772 = vmatmul.msk.f32.gmra.mxu2 %vm415_vm4, %v412_v54 }
 0x1fb   : > { %v461_v55 = vpop.f32.mrf.mxu1 }
 0x1fc   : > { %v486_v56 = vsel %vm485_vm5, %v461_v55, 0.0 }
 0x1fd   : > { %487 = vadd.xlane.f32.xlu1 %v486_v56 }
 0x202   : > { %v470_v57 = vpop.f32.mrf.mxu2  ;;  %v479_v61 = vpop.f32.mrf.mxu3 }
 0x203   : > { %v464_v58 = vpop.f32.mrf.mxu1  ;;  %v495_v59 = vsel %vm485_vm5, %v470_v57, 0.0  ;;  %v504_v63 = vsel %vm485_vm5, %v479_v61, 0.0 }
 0x204   : > { %v489_v60 = vsel %vm485_vm5, %v464_v58, 0.0 }
 0x205   : > { %496 = vadd.xlane.f32.xlu1 %v495_v59  ;;  %490 = vadd.xlane.f32.xlu2 %v489_v60 }
 0x20a   : > { %v473_v62 = vpop.f32.mrf.mxu2  ;;  %v482_v3 = vpop.f32.mrf.mxu3 }
 0x20b   : > { %v467_v0 = vpop.f32.mrf.mxu1  ;;  %v498_v1 = vsel %vm485_vm5, %v473_v62, 0.0  ;;  %v507_v5 = vsel %vm485_vm5, %v482_v3, 0.0 }
 0x20c   : > { %v492_v2 = vsel %vm485_vm5, %v467_v0, 0.0 }
 0x20d   : > { %505 = vadd.xlane.f32.xlu1 %v504_v63  ;;  %499 = vadd.xlane.f32.xlu2 %v498_v1 }
 0x20e   : > { %493 = vadd.xlane.f32.xlu0 %v492_v2 }
 0x212   : > { %v476_v4 = vpop.f32.mrf.mxu2 }
 0x213   : > { %v501_v6 = vsel %vm485_vm5, %v476_v4, 0.0 }
 0x215   : > { %508 = vadd.xlane.f32.xlu2 %v507_v5 }
 0x216   : > { %502 = vadd.xlane.f32.xlu0 %v501_v6 }
 0x270   : > { %v488_v7 = vpop.xlane.xlu1 %487 }
 0x271   : > { %v775_v8 = vmul.f32 -1.442695, %v488_v7 }
 0x273   : > { %862 = vpow2.f32 %v775_v8 }
 0x278   : > { %v497_v9 = vpop.xlane.xlu1 %496  ;;  %v491_v10 = vpop.xlane.xlu2 %490 }
 0x279   : > { %v863_v11 = vpop.eup %862  ;;  %v778_v12 = vmul.f32 -1.442695, %v497_v9  ;;  %v776_v13 = vmul.f32 -1.442695, %v491_v10 }
 0x27a   : > { %v534_v14 = vadd.f32 1.0, %v863_v11 }
 0x27b   : > { %864 = vpow2.f32 %v778_v12 }
 0x27c   : > { %866 = vrcp.f32 %v534_v14  ;;  %v553_v28 = vand.u32 2147483648, %v534_v14  ;;  %v551_v30 = vand.u32 2147483647, %v534_v14  ;;  %vm547_vm7 = vweird.f32 %v534_v14 }
 0x27d   : > { %868 = vpow2.f32 %v776_v13 }
 0x27e   : > { %v554_v37 = vor.u32 1.1754944e-38, %v553_v28  ;;  %vm552_vm9 = vcmp.eq.f32.partialorder %v551_v30, 8.507059e+37 }
 0x280   : > { %v506_v15 = vpop.xlane.xlu1 %505  ;;  %v500_v16 = vpop.xlane.xlu2 %499 }
 0x281   : > { %v865_v17 = vpop.eup %864  ;;  %v781_v18 = vmul.f32 -1.442695, %v506_v15  ;;  %v779_v19 = vmul.f32 -1.442695, %v500_v16  ;;  %v494_v20 = vpop.xlane.xlu0 %493 }
 0x282   : > { %v867_v21 = vpop.eup %866  ;;  %v1209_v22 = vadd.f32 1.0, %v865_v17  ;;  %v777_v23 = vmul.f32 -1.442695, %v494_v20 }
 0x283   : > { %v869_v24 = vpop.eup %868  ;;  %v543_v25 = vmul.f32 %v867_v21, %v534_v14  ;;  %870 = vpow2.f32 %v781_v18  ;;  %vm548_vm6 = vweird.f32 %v867_v21 }
 0x284   : > { %872 = vrcp.f32 %v1209_v22  ;;  %v1212_v27 = vadd.f32 1.0, %v869_v24  ;;  %vm549_vm8 = vmor %vm547_vm7, %vm548_vm6  ;;  %v598_v47 = vand.u32 2147483648, %v1209_v22  ;;  %v596_v52 = vand.u32 2147483647, %v1209_v22 }
 0x285   : > { %v544_v26 = vsub.f32 1.0, %v543_v25  ;;  %874 = vpow2.f32 %v779_v19  ;;  %vm592_vm11 = vweird.f32 %v1209_v22 }
 0x286   : > { %876 = vpow2.f32 %v777_v23  ;;  %v566_v54 = vand.u32 2147483647, %v1212_v27  ;;  %v599_v57 = vor.u32 1.1754944e-38, %v598_v47  ;;  %v568_v58 = vand.u32 2147483648, %v1212_v27 }
 0x287   : > { %v545_v29 = vmul.f32 %v867_v21, %v544_v26  ;;  %878 = vrcp.f32 %v1212_v27  ;;  %vm597_vm14 = vcmp.eq.f32.partialorder %v596_v52, 8.507059e+37  ;;  %vm562_vm15 = vweird.f32 %v1212_v27 }
 0x288   : > { %v509_v31 = vpop.xlane.xlu2 %508  ;;  %vm567_vm0 = vcmp.eq.f32.partialorder %v566_v54, 8.507059e+37  ;;  %v569_v6 = vor.u32 1.1754944e-38, %v568_v58 }
 0x289   : > { %v871_v32 = vpop.eup %870  ;;  %v546_v33 = vadd.f32 %v867_v21, %v545_v29  ;;  %v782_v34 = vmul.f32 -1.442695, %v509_v31  ;;  %v503_v35 = vpop.xlane.xlu0 %502 }
 0x28a   : > { %v873_v36 = vpop.eup %872  ;;  %v1215_v38 = vadd.f32 1.0, %v871_v32  ;;  %v780_v39 = vmul.f32 -1.442695, %v503_v35 }
 0x28b   : > { %v875_v40 = vpop.eup %874  ;;  %v550_v41 = vsel %vm549_vm8, %v867_v21, %v546_v33  ;;  %v588_v42 = vmul.f32 %v873_v36, %v1209_v22  ;;  %880 = vpow2.f32 %v782_v34  ;;  %vm593_vm10 = vweird.f32 %v873_v36 }
 0x28c   : > { %v877_v43 = vpop.eup %876  ;;  %v555_v44 = vsel %vm552_vm9, %v554_v37, %v550_v41  ;;  %882 = vrcp.f32 %v1215_v38  ;;  %v1222_v48 = vadd.f32 1.0, %v875_v40  ;;  %v641_v59 = vand.u32 2147483647, %v1215_v38  ;;  %vm594_vm12 = vmor %vm592_vm11, %vm593_vm10 }
 0x28d   : > { %v879_v45 = vpop.eup %878  ;;  %662 = vst.msk [vmem:[%s1105_s10] sm:$0xff] %vm372_vm1, %v555_v44  ;;  %v589_v46 = vsub.f32 1.0, %v588_v42  ;;  %v1224_v49 = vadd.f32 1.0, %v877_v43  ;;  %884 = vpow2.f32 %v780_v39  ;;  %v643_v62 = vand.u32 2147483648, %v1215_v38 }
 0x28e   : > { %v558_v50 = vmul.f32 %v879_v45, %v1212_v27  ;;  %886 = vrcp.f32 %v1222_v48  ;;  %vm563_vm13 = vweird.f32 %v879_v45  ;;  %vm637_vm3 = vweird.f32 %v1215_v38 }
 0x28f   : > { %v590_v51 = vmul.f32 %v873_v36, %v589_v46  ;;  %888 = vrcp.f32 %v1224_v49  ;;  %vm564_vm2 = vmor %vm562_vm15, %vm563_vm13  ;;  %vm1243_vm4 = vcmp.eq.f32.partialorder %v641_v59, 8.507059e+37  ;;  %v644_v11 = vor.u32 1.1754944e-38, %v643_v62 }
 0x290   : > { %v559_v53 = vsub.f32 1.0, %v558_v50  ;;  %v611_v18 = vand.u32 2147483647, %v1222_v48  ;;  %v613_v19 = vand.u32 2147483648, %v1222_v48  ;;  %v581_v22 = vand.u32 2147483647, %v1224_v49 }
 0x291   : > { %v881_v55 = vpop.eup %880  ;;  %v591_v56 = vadd.f32 %v873_v36, %v590_v51  ;;  %v583_v23 = vand.u32 2147483648, %v1224_v49  ;;  %vm607_vm7 = vweird.f32 %v1222_v48  ;;  %vm577_vm9 = vweird.f32 %v1224_v49 }
 0x292   : > { %v883_v60 = vpop.eup %882  ;;  %v560_v61 = vmul.f32 %v879_v45, %v559_v53  ;;  %v1235_v63 = vadd.f32 1.0, %v881_v55  ;;  %vm612_vm11 = vcmp.eq.f32.partialorder %v611_v18, 8.507059e+37  ;;  %v614_v31 = vor.u32 1.1754944e-38, %v613_v19 }
 0x293   : > { %v595_v0 = vsel %vm594_vm12, %v873_v36, %v591_v56  ;;  %v633_v1 = vmul.f32 %v883_v60, %v1215_v38  ;;  %v885_v2 = vpop.eup %884  ;;  %vm638_vm5 = vweird.f32 %v883_v60  ;;  %vm582_vm13 = vcmp.eq.f32.partialorder %v581_v22, 8.507059e+37 }
 0x294   : > { %v600_v3 = vsel %vm597_vm14, %v599_v57, %v595_v0  ;;  %v561_v4 = vadd.f32 %v879_v45, %v560_v61  ;;  %890 = vrcp.f32 %v1235_v63  ;;  %v887_v5 = vpop.eup %886  ;;  %v1248_v13 = vadd.f32 1.0, %v885_v2  ;;  %vm639_vm6 = vmor %vm637_vm3, %vm638_vm5 }
 0x295   : > { %665 = vst.msk [vmem:[%s1105_s10 + $0x18] sm:$0xff] %vm372_vm1, %v600_v3  ;;  %v634_v7 = vsub.f32 1.0, %v633_v1  ;;  %v889_v9 = vpop.eup %888  ;;  %v603_v12 = vmul.f32 %v887_v5, %v1222_v48  ;;  %vm608_vm8 = vweird.f32 %v887_v5  ;;  %v584_v33 = vor.u32 1.1754944e-38, %v583_v23 }
 0x296   : > { %v565_v10 = vsel %vm564_vm2, %v879_v45, %v561_v4  ;;  %v573_v16 = vmul.f32 %v889_v9, %v1224_v49  ;;  %892 = vrcp.f32 %v1248_v13  ;;  %vm578_vm10 = vweird.f32 %v889_v9  ;;  %vm609_vm12 = vmor %vm607_vm7, %vm608_vm8 }
 0x297   : > { %v570_v14 = vsel %vm567_vm0, %v569_v6, %v565_v10  ;;  %v635_v15 = vmul.f32 %v883_v60, %v634_v7  ;;  %v604_v17 = vsub.f32 1.0, %v603_v12  ;;  %vm579_vm14 = vmor %vm577_vm9, %vm578_vm10  ;;  %v656_v37 = vand.u32 2147483647, %v1235_v63 }
 0x298   : > { %663 = vst.msk [vmem:[%s1105_s10 + $0x8] sm:$0xff] %vm372_vm1, %v570_v14  ;;  %v574_v21 = vsub.f32 1.0, %v573_v16  ;;  %v658_v38 = vand.u32 2147483648, %v1235_v63  ;;  %vm652_vm0 = vweird.f32 %v1235_v63  ;;  %v628_v47 = vand.u32 2147483648, %v1248_v13 }
 0x299   : > { %v636_v20 = vadd.f32 %v883_v60, %v635_v15  ;;  %v605_v25 = vmul.f32 %v887_v5, %v604_v17  ;;  %vm657_vm3 = vcmp.eq.f32.partialorder %v656_v37, 8.507059e+37  ;;  %v626_v50 = vand.u32 2147483647, %v1248_v13 }
 0x29a   : > { %v891_v24 = vpop.eup %890  ;;  %v575_v27 = vmul.f32 %v889_v9, %v574_v21  ;;  %v659_v46 = vor.u32 1.1754944e-38, %v658_v38  ;;  %vm622_vm5 = vweird.f32 %v1248_v13  ;;  %v629_v53 = vor.u32 1.1754944e-38, %v628_v47 }
 0x29b   : > { %v640_v26 = vsel %vm639_vm6, %v883_v60, %v636_v20  ;;  %v648_v28 = vmul.f32 %v891_v24, %v1235_v63  ;;  %v606_v30 = vadd.f32 %v887_v5, %v605_v25  ;;  %vm653_vm15 = vweird.f32 %v891_v24 }
 0x29c   : > { %v645_v29 = vsel %vm1243_vm4, %v644_v11, %v640_v26  ;;  %v576_v32 = vadd.f32 %v889_v9, %v575_v27  ;;  %v893_v35 = vpop.eup %892  ;;  %vm654_vm2 = vmor %vm652_vm0, %vm653_vm15  ;;  %vm627_vm7 = vcmp.eq.f32.partialorder %v626_v50, 8.507059e+37 }
 0x29d   : > { %668 = vst.msk [vmem:[%s1105_s10 + $0x30] sm:$0xff] %vm372_vm1, %v645_v29  ;;  %v649_v34 = vsub.f32 1.0, %v648_v28  ;;  %v610_v36 = vsel %vm609_vm12, %v887_v5, %v606_v30  ;;  %v618_v42 = vmul.f32 %v893_v35, %v1248_v13  ;;  %vm623_vm4 = vweird.f32 %v893_v35 }
 0x29e   : > { %v615_v39 = vsel %vm612_vm11, %v614_v31, %v610_v36  ;;  %v580_v40 = vsel %vm579_vm14, %v889_v9, %v576_v32  ;;  %vm624_vm6 = vmor %vm622_vm5, %vm623_vm4 }
 0x29f   : > { %v650_v41 = vmul.f32 %v891_v24, %v649_v34  ;;  %666 = vst.msk [vmem:[%s1105_s10 + $0x20] sm:$0xff] %vm372_vm1, %v615_v39  ;;  %v585_v43 = vsel %vm582_vm13, %v584_v33, %v580_v40  ;;  %v619_v45 = vsub.f32 1.0, %v618_v42 }
 0x2a0   : > { %664 = vst.msk [vmem:[%s1105_s10 + $0x10] sm:$0xff] %vm372_vm1, %v585_v43 }
 0x2a1   : > { %v651_v44 = vadd.f32 %v891_v24, %v650_v41  ;;  %v620_v49 = vmul.f32 %v893_v35, %v619_v45 }
 0x2a3   : > { %v655_v48 = vsel %vm654_vm2, %v891_v24, %v651_v44  ;;  %v621_v52 = vadd.f32 %v893_v35, %v620_v49 }
 0x2a4   : > { %v660_v51 = vsel %vm657_vm3, %v659_v46, %v655_v48 }
 0x2a5   : > { %669 = vst.msk [vmem:[%s1105_s10 + $0x38] sm:$0xff] %vm372_vm1, %v660_v51  ;;  %v625_v54 = vsel %vm624_vm6, %v893_v35, %v621_v52 }
 0x2a6   : > { %v630_v55 = vsel %vm627_vm7, %v629_v53, %v625_v54 }
 0x2a7   : > { %667 = vst.msk [vmem:[%s1105_s10 + $0x28] sm:$0xff] %vm372_vm1, %v630_v55 }
 0x2a8 PF: > { %s16_s19 = sadd.s32 1, %s990_s19   ;;  %s1316_s12 = smov %s966_s13 }
 0x2a9   : > { %p13_p4 = scmp.ge.s32.totalorder %s16_s19, 6   ;;  %s1317_s13 = smov %s970_s14 }
 0x2aa   : > { %s1318_s14 = smov %s1082_s5  ;;  %s1319_s15 = smov %s982_s17 }
 0x2ab   : > { %s1320_s16 = smov %s986_s18  ;;  %s1321_s17 = smov %s1324_s21 }
 0x2ac   : > { %s1322_s18 = smov %s1328_s22  ;;  %15 = sbr.rel (!%p13_p4) target bundleno = 5 (0x5), region = 84 }
 0x2b1   :  { %691 = vsyncpa [#allocation5], 1 }
 0x2b2   :  { %693 = vsyncpa [#allocation5 + $0x1], 1 }

</bundles_post_ra>
